<compile_context>
chip_gen: v7x
topology: tpu7x:2x2x1
jax: 0.10.0
libtpu: 0.0.40
codegen_flags: <defaults>
</compile_context>

<pallas_src>
import functools

import jax
import jax.numpy as jnp
from jax.experimental import pallas as pl
from jax.experimental.pallas import tpu as pltpu


def _round_up(x, m):
    return (x + m - 1) // m * m


def _inv_predictor_kernel(obs_ref, nobs_ref, w1a_ref, w1b_ref, b1_ref,
                          w2_ref, b2_ref, w3_ref, b3_ref, out_ref):
    # cat([obs, next_obs], -1) @ W1  ==  obs @ W1[:d] + next_obs @ W1[d:]
    h = jnp.dot(obs_ref[...], w1a_ref[...], preferred_element_type=jnp.float32)
    h = h + jnp.dot(nobs_ref[...], w1b_ref[...],
                    preferred_element_type=jnp.float32)
    h = jnp.maximum(h + b1_ref[...], 0.0)                       # ReLU
    h = jnp.maximum(
        jnp.dot(h, w2_ref[...], preferred_element_type=jnp.float32)
        + b2_ref[...], 0.0)                                     # ReLU
    out_ref[...] = (jnp.dot(h, w3_ref[...], preferred_element_type=jnp.float32)
                    + b3_ref[...]).astype(out_ref.dtype)


@functools.partial(jax.jit, static_argnames=("block_rows", "compute_dtype"))
def inv_predictor_forward(obs, next_obs, params, *, block_rows=512,
                          compute_dtype=jnp.float32):
    """Returns pred_action matching SelfSupervisedMlpInvPredictor.forward."""
    B, obs_dim = obs.shape
    hidden = params["w1"].shape[1]
    A = params["w3"].shape[1]

    # Lane-dense output slab: pad action dim to a multiple of 128.
    A_pad = _round_up(A, 128)
    w3p = jnp.zeros((hidden, A_pad), jnp.float32).at[:, :A].set(params["w3"])
    b3p = jnp.zeros((1, A_pad), jnp.float32).at[:, :A].set(params["b3"])

    # Split W1 so the concat never materializes.
    w1a = params["w1"][:obs_dim]
    w1b = params["w1"][obs_dim:]

    # Batch tiling: TM rows per grid step (multiple of 8), weights resident.
    TM = min(block_rows, _round_up(B, 8))
    B_pad = _round_up(B, TM)
    if B_pad != B:
        pad = ((0, B_pad - B), (0, 0))
        obs = jnp.pad(obs, pad)
        next_obs = jnp.pad(next_obs, pad)

    # Optional bf16 matmul operands (f32 accumulation inside the kernel).
    obs_c = obs.astype(compute_dtype)
    nobs_c = next_obs.astype(compute_dtype)
    w1a_c = w1a.astype(compute_dtype)
    w1b_c = w1b.astype(compute_dtype)
    w2_c = params["w2"].astype(compute_dtype)
    w3_c = w3p.astype(compute_dtype)

    def row_spec(shape):            # blocked along batch
        return pl.BlockSpec(shape, lambda i: (i, 0))

    def full_spec(shape):           # resident across all grid steps
        return pl.BlockSpec(shape, lambda i: (0, 0))

    out = pl.pallas_call(
        _inv_predictor_kernel,
        out_shape=jax.ShapeDtypeStruct((B_pad, A_pad), jnp.float32),
        grid=(B_pad // TM,),
        in_specs=[
            row_spec((TM, obs_dim)),       # obs
            row_spec((TM, obs_dim)),       # next_obs
            full_spec((obs_dim, hidden)),  # W1[:obs_dim]
            full_spec((obs_dim, hidden)),  # W1[obs_dim:]
            full_spec((1, hidden)),        # b1
            full_spec((hidden, hidden)),   # W2
            full_spec((1, hidden)),        # b2
            full_spec((hidden, A_pad)),    # W3 (lane-padded)
            full_spec((1, A_pad)),         # b3 (lane-padded)
        ],
        out_specs=row_spec((TM, A_pad)),
        compiler_params=pltpu.CompilerParams(
            dimension_semantics=("parallel",)),
    )(obs_c, nobs_c, w1a_c, w1b_c, params["b1"], w2_c, params["b2"],
      w3_c, b3p)

    return out[:B, :A]


def _orthogonal(key, shape, gain=1.0):
    # Deterministic orthogonal init (mimics weight_init's nn.init.orthogonal_).
    a = jax.random.normal(key, shape, dtype=jnp.float32)
    q, r = jnp.linalg.qr(a if shape[0] >= shape[1] else a.T)
    q = q * jnp.sign(jnp.diag(r))
    if shape[0] < shape[1]:
        q = q.T
    return gain * q[: shape[0], : shape[1]]


def init_params(key, obs_dim, hidden_dim, action_dim):
    k1, k2, k3 = jax.random.split(key, 3)
    gain = jnp.sqrt(2.0)
    return {
        # stored as (in, out): transpose of torch's nn.Linear weight
        "w1": _orthogonal(k1, (2 * obs_dim, hidden_dim), gain),
        "b1": jnp.zeros((1, hidden_dim), jnp.float32),
        "w2": _orthogonal(k2, (hidden_dim, hidden_dim), gain),
        "b2": jnp.zeros((1, hidden_dim), jnp.float32),
        "w3": _orthogonal(k3, (hidden_dim, action_dim), gain),
        "b3": jnp.zeros((1, action_dim), jnp.float32),
    }


def _reference_forward(obs, next_obs, params):
    with jax.default_matmul_precision("highest"):
        joint = jnp.concatenate([obs, next_obs], axis=-1)
        h = jax.nn.relu(joint @ params["w1"] + params["b1"])
        h = jax.nn.relu(h @ params["w2"] + params["b2"])
        return h @ params["w3"] + params["b3"]


if __name__ == "__main__":
    obs_dim, hidden_dim, action_dim, batch = 16, 32, 4, 8

    key = jax.random.PRNGKey(0)
    k_obs, k_next, k_par = jax.random.split(key, 3)

    obs = jax.random.normal(k_obs, (batch, obs_dim), dtype=jnp.float32)
    next_obs = jax.random.normal(k_next, (batch, obs_dim), dtype=jnp.float32)
    params = init_params(k_par, obs_dim, hidden_dim, action_dim)

    pred = inv_predictor_forward(obs, next_obs, params)
    jax.block_until_ready(pred)

    ref = _reference_forward(obs, next_obs, params)
    assert pred.shape == (batch, action_dim)
    assert jnp.allclose(pred, ref, atol=1e-4, rtol=1e-4)

    print("KERNEL_OK")
</pallas_src>

<mosaic_0001>
module attributes {stable_mosaic.version = 11 : i64} {
  func.func @_inv_predictor_kernel(%arg0: i32, %arg1: memref<8x16xf32, #tpu.memory_space<vmem>>, %arg2: memref<8x16xf32, #tpu.memory_space<vmem>>, %arg3: memref<16x32xf32, #tpu.memory_space<vmem>>, %arg4: memref<16x32xf32, #tpu.memory_space<vmem>>, %arg5: memref<1x32xf32, #tpu.memory_space<vmem>>, %arg6: memref<32x32xf32, #tpu.memory_space<vmem>>, %arg7: memref<1x32xf32, #tpu.memory_space<vmem>>, %arg8: memref<32x128xf32, #tpu.memory_space<vmem>>, %arg9: memref<1x128xf32, #tpu.memory_space<vmem>>, %arg10: memref<8x128xf32, #tpu.memory_space<vmem>>) attributes {dimension_semantics = [#tpu.dimension_semantics<parallel>], iteration_bounds = array<i64: 1>, scalar_prefetch = 0 : i64, scratch_operands = 0 : i64, tpu.core_type = #tpu.core_type<tc>, window_params = [{transform_indices = @transform_0, window_bounds = array<i64: 8, 16>}, {transform_indices = @transform_1, window_bounds = array<i64: 8, 16>}, {pipeline_mode = #tpu.pipeline_mode<synchronous>, transform_indices = @transform_2, window_bounds = array<i64: 16, 32>}, {pipeline_mode = #tpu.pipeline_mode<synchronous>, transform_indices = @transform_3, window_bounds = array<i64: 16, 32>}, {pipeline_mode = #tpu.pipeline_mode<synchronous>, transform_indices = @transform_4, window_bounds = array<i64: 1, 32>}, {pipeline_mode = #tpu.pipeline_mode<synchronous>, transform_indices = @transform_5, window_bounds = array<i64: 32, 32>}, {pipeline_mode = #tpu.pipeline_mode<synchronous>, transform_indices = @transform_6, window_bounds = array<i64: 1, 32>}, {pipeline_mode = #tpu.pipeline_mode<synchronous>, transform_indices = @transform_7, window_bounds = array<i64: 32, 128>}, {pipeline_mode = #tpu.pipeline_mode<synchronous>, transform_indices = @transform_8, window_bounds = array<i64: 1, 128>}, {transform_indices = @transform_9, window_bounds = array<i64: 8, 128>}]} {
    %c0 = arith.constant 0 : index
    %c0_0 = arith.constant 0 : index
    %0 = vector.load %arg1[%c0, %c0_0] : memref<8x16xf32, #tpu.memory_space<vmem>>, vector<8x16xf32>
    %c0_1 = arith.constant 0 : index
    %c0_2 = arith.constant 0 : index
    %1 = vector.load %arg3[%c0_1, %c0_2] : memref<16x32xf32, #tpu.memory_space<vmem>>, vector<16x32xf32>
    %cst = arith.constant dense<0.000000e+00> : vector<8x32xf32>
    %2 = tpu.matmul %0, %1, %cst {dimension_numbers = #tpu.dot_dimension_numbers<[1], [0], [0], [1], [0, 0, 1, 1], [], []>} : vector<8x16xf32>, vector<16x32xf32>, vector<8x32xf32> -> vector<8x32xf32>
    %c0_3 = arith.constant 0 : index
    %c0_4 = arith.constant 0 : index
    %3 = vector.load %arg2[%c0_3, %c0_4] : memref<8x16xf32, #tpu.memory_space<vmem>>, vector<8x16xf32>
    %c0_5 = arith.constant 0 : index
    %c0_6 = arith.constant 0 : index
    %4 = vector.load %arg4[%c0_5, %c0_6] : memref<16x32xf32, #tpu.memory_space<vmem>>, vector<16x32xf32>
    %cst_7 = arith.constant dense<0.000000e+00> : vector<8x32xf32>
    %5 = tpu.matmul %3, %4, %cst_7 {dimension_numbers = #tpu.dot_dimension_numbers<[1], [0], [0], [1], [0, 0, 1, 1], [], []>} : vector<8x16xf32>, vector<16x32xf32>, vector<8x32xf32> -> vector<8x32xf32>
    %6 = arith.addf %2, %5 : vector<8x32xf32>
    %c0_8 = arith.constant 0 : index
    %c0_9 = arith.constant 0 : index
    %7 = vector.load %arg5[%c0_8, %c0_9] : memref<1x32xf32, #tpu.memory_space<vmem>>, vector<1x32xf32>
    %8 = vector.broadcast %7 : vector<1x32xf32> to vector<8x32xf32>
    %9 = arith.addf %6, %8 : vector<8x32xf32>
    %cst_10 = arith.constant 0.000000e+00 : f32
    %10 = vector.broadcast %cst_10 : f32 to vector<8x32xf32>
    %11 = arith.maximumf %9, %10 : vector<8x32xf32>
    %c0_11 = arith.constant 0 : index
    %c0_12 = arith.constant 0 : index
    %12 = vector.load %arg6[%c0_11, %c0_12] : memref<32x32xf32, #tpu.memory_space<vmem>>, vector<32x32xf32>
    %cst_13 = arith.constant dense<0.000000e+00> : vector<8x32xf32>
    %13 = tpu.matmul %11, %12, %cst_13 {dimension_numbers = #tpu.dot_dimension_numbers<[1], [0], [0], [1], [0, 0, 1, 1], [], []>} : vector<8x32xf32>, vector<32x32xf32>, vector<8x32xf32> -> vector<8x32xf32>
    %c0_14 = arith.constant 0 : index
    %c0_15 = arith.constant 0 : index
    %14 = vector.load %arg7[%c0_14, %c0_15] : memref<1x32xf32, #tpu.memory_space<vmem>>, vector<1x32xf32>
    %15 = vector.broadcast %14 : vector<1x32xf32> to vector<8x32xf32>
    %16 = arith.addf %13, %15 : vector<8x32xf32>
    %cst_16 = arith.constant 0.000000e+00 : f32
    %17 = vector.broadcast %cst_16 : f32 to vector<8x32xf32>
    %18 = arith.maximumf %16, %17 : vector<8x32xf32>
    %c0_17 = arith.constant 0 : index
    %c0_18 = arith.constant 0 : index
    %19 = vector.load %arg8[%c0_17, %c0_18] : memref<32x128xf32, #tpu.memory_space<vmem>>, vector<32x128xf32>
    %cst_19 = arith.constant dense<0.000000e+00> : vector<8x128xf32>
    %20 = tpu.matmul %18, %19, %cst_19 {dimension_numbers = #tpu.dot_dimension_numbers<[1], [0], [0], [1], [0, 0, 1, 1], [], []>} : vector<8x32xf32>, vector<32x128xf32>, vector<8x128xf32> -> vector<8x128xf32>
    %c0_20 = arith.constant 0 : index
    %c0_21 = arith.constant 0 : index
    %21 = vector.load %arg9[%c0_20, %c0_21] : memref<1x128xf32, #tpu.memory_space<vmem>>, vector<1x128xf32>
    %22 = vector.broadcast %21 : vector<1x128xf32> to vector<8x128xf32>
    %23 = arith.addf %20, %22 : vector<8x128xf32>
    %c0_22 = arith.constant 0 : index
    %c0_23 = arith.constant 0 : index
    %24 = vector.load %arg10[%c0_22, %c0_23] : memref<8x128xf32, #tpu.memory_space<vmem>>, vector<8x128xf32>
    tpu.vector_store %arg10[%c0_22, %c0_23], %23 {strides = array<i32>} : memref<8x128xf32, #tpu.memory_space<vmem>>, vector<8x128xf32>,
    return
  }
  func.func @transform_0(%arg0: i32) -> (i32, i32) {
    %c0_i32 = arith.constant 0 : i32
    %c0_i32_0 = arith.constant 0 : i32
    return %arg0, %c0_i32 : i32, i32
  }
  func.func @transform_1(%arg0: i32) -> (i32, i32) {
    %c0_i32 = arith.constant 0 : i32
    %c0_i32_0 = arith.constant 0 : i32
    return %arg0, %c0_i32 : i32, i32
  }
  func.func @transform_2(%arg0: i32) -> (i32, i32) {
    %c0_i32 = arith.constant 0 : i32
    %c0_i32_0 = arith.constant 0 : i32
    %c0_i32_1 = arith.constant 0 : i32
    return %c0_i32, %c0_i32_0 : i32, i32
  }
  func.func @transform_3(%arg0: i32) -> (i32, i32) {
    %c0_i32 = arith.constant 0 : i32
    %c0_i32_0 = arith.constant 0 : i32
    %c0_i32_1 = arith.constant 0 : i32
    return %c0_i32, %c0_i32_0 : i32, i32
  }
  func.func @transform_4(%arg0: i32) -> (i32, i32) {
    %c0_i32 = arith.constant 0 : i32
    %c0_i32_0 = arith.constant 0 : i32
    %c0_i32_1 = arith.constant 0 : i32
    return %c0_i32, %c0_i32_0 : i32, i32
  }
  func.func @transform_5(%arg0: i32) -> (i32, i32) {
    %c0_i32 = arith.constant 0 : i32
    %c0_i32_0 = arith.constant 0 : i32
    %c0_i32_1 = arith.constant 0 : i32
    return %c0_i32, %c0_i32_0 : i32, i32
  }
  func.func @transform_6(%arg0: i32) -> (i32, i32) {
    %c0_i32 = arith.constant 0 : i32
    %c0_i32_0 = arith.constant 0 : i32
    %c0_i32_1 = arith.constant 0 : i32
    return %c0_i32, %c0_i32_0 : i32, i32
  }
  func.func @transform_7(%arg0: i32) -> (i32, i32) {
    %c0_i32 = arith.constant 0 : i32
    %c0_i32_0 = arith.constant 0 : i32
    %c0_i32_1 = arith.constant 0 : i32
    return %c0_i32, %c0_i32_0 : i32, i32
  }
  func.func @transform_8(%arg0: i32) -> (i32, i32) {
    %c0_i32 = arith.constant 0 : i32
    %c0_i32_0 = arith.constant 0 : i32
    %c0_i32_1 = arith.constant 0 : i32
    return %c0_i32, %c0_i32_0 : i32, i32
  }
  func.func @transform_9(%arg0: i32) -> (i32, i32) {
    %c0_i32 = arith.constant 0 : i32
    %c0_i32_0 = arith.constant 0 : i32
    return %arg0, %c0_i32 : i32, i32
  }
}

</mosaic_0001>

<bundles_post_ra>
// kernel: inv_predictor_forward.1
= control target key start
LH: loop header
LB: loop body
LE: loop exit
PB: predicated region body
PF: predicated region fallthrough
CT: control target
= control target key end

     0   :  { %v449_v0 = vmov 0.0|0.0   ;;  %vm450_vm0 = vmmov 0   ;;  %v451_v6 = vmov 0.0   ;;  %vm38_vm1 = vcmask 130048   ;;  %s560_s3 = inlined_call_operand.vmem [shape: f32[16,32], index: 3, kind: input, shape index: {}]   ;;  %s561_s2 = inlined_call_operand.vmem [shape: f32[16,32], index: 2, kind: input, shape index: {}]   ;;  %s562_s1 = inlined_call_operand.vmem [shape: f32[8,16], index: 1, kind: input, shape index: {}]   ;;  %s563_s0 = inlined_call_operand.vmem [shape: f32[8,16], index: 0, kind: input, shape index: {}]   ;;  %s564_s5 = inlined_call_operand.vmem [shape: f32[32,32], index: 5, kind: input, shape index: {}]   ;;  %s565_s7 = inlined_call_operand.vmem [shape: f32[32,128], index: 7, kind: input, shape index: {}]   ;;  %s566_s4 = inlined_call_operand.vmem [shape: f32[1,32], index: 4, kind: input, shape index: {}]   ;;  %s567_s6 = inlined_call_operand.vmem [shape: f32[1,32], index: 6, kind: input, shape index: {}]   ;;  %s568_s8 = inlined_call_operand.vmem [shape: f32[1,128], index: 8, kind: input, shape index: {}]   ;;  %s569_s9 = inlined_call_operand.vmem [shape: f32[8,128], index: 9, kind: output, shape index: {}]  }
   0x1   :  { %428 = vmatprep.subr.bf16.mxu0 %v449_v0  ;;  %431 = vmatprep.subr.bf16.mxu1 %v449_v0  ;;  %v36_v1 = vld [vmem:[%s560_s3] sm:$0xff]  ;;  %v37_v2 = vld [vmem:[%s560_s3 + $0x8] sm:$0xff]  ;;  %v196_v13 = vld [vmem:[%s564_s5 + $0x10] sm:$0xff]  ;;  %vm205_vm2 = vcmask 261120  }
   0x2   :  { %v33_v3 = vld [vmem:[%s561_s2] sm:$0xff]  ;;  %v429_v4 = vpack.c.bf16 %v37_v2, %v36_v1  ;;  %v34_v5 = vld [vmem:[%s561_s2 + $0x8] sm:$0xff]  ;;  %396 = vmatprep.mubr.msk.f32.mxu0 %vm450_vm0, %v451_v6  ;;  %403 = vmatprep.mubr.msk.f32.mxu1 %vm450_vm0, %v451_v6  ;;  %v197_v14 = vld [vmem:[%s564_s5 + $0x18] sm:$0xff] }
   0x3   :  { %v432_v7 = vpack.c.bf16 %v34_v5, %v33_v3  ;;  %v35_v8 = vld [vmem:[%s562_s1] sm:$0xff]  ;;  %v195_v11 = vld [vmem:[%s564_s5 + $0x8] sm:$0xff]  ;;  %v438_v15 = vpack.c.bf16 %v197_v14, %v196_v13  ;;  %v282_v27 = vld [vmem:[%s565_s7 + $0x10] sm:$0xff] }
   0x4   :  { %430 = vmatpush3.bf16.msra.mxu0 %v429_v4  ;;  %v32_v9 = vld [vmem:[%s563_s0] sm:$0xff]  ;;  %v281_v17 = vld [vmem:[%s565_s7 + $0x8] sm:$0xff]  ;;  %v283_v28 = vld [vmem:[%s565_s7 + $0x18] sm:$0xff] }
   0x5   :  { %433 = vmatpush3.bf16.msra.mxu1 %v432_v7  ;;  %434 = vmatprep.subr.bf16.mxu0 %v449_v0  ;;  %v194_v10 = vld [vmem:[%s564_s5] sm:$0xff]  ;;  %v444_v29 = vpack.c.bf16 %v283_v28, %v282_v27 }
   0x6   :  { %440 = vmatprep.subr.bf16.mxu1 %v449_v0  ;;  %v435_v12 = vpack.c.bf16 %v195_v11, %v194_v10  ;;  %v280_v16 = vld [vmem:[%s565_s7] sm:$0xff] }
   0x7   :  { %397 = vmatmul.mubr.msk.f32.vlgmr.msra.gmra.mrb[0].mxu0 %vm38_vm1, %v35_v8  ;;  %v441_v18 = vpack.c.bf16 %v281_v17, %v280_v16  ;;  %v371_v21 = vld [vmem:[%s566_s4] ss:$0 sm:$0xff] }
   0x8   :  { %404 = vmatmul.mubr.msk.f32.vlgmr.msra.gmra.mrb[0].mxu1 %vm38_vm1, %v32_v9  ;;  %414 = vmatprep.mubr.msk.f32.mxu0 %vm450_vm0, %v451_v6  ;;  %v372_v30 = vld [vmem:[%s567_s6] ss:$0 sm:$0xff] }
   0x9   :  { %425 = vmatprep.mubr.msk.f32.mxu1 %vm450_vm0, %v451_v6  ;;  %436 = vmatpush3.bf16.msra.mxu0 %v435_v12  ;;  %v374_v35 = vld [vmem:[%s568_s8] ss:$0 sm:$0xff] }
   0xa   :  { %437 = vmatprep.subr.bf16.mxu0 %v449_v0  ;;  %442 = vmatpush3.bf16.msra.mxu1 %v441_v18 }
   0xb   :  { %443 = vmatprep.subr.bf16.mxu1 %v449_v0 }
   0xd   :  { %439 = vmatpush3.bf16.msra.mxu0 %v438_v15 }
   0xe   :  { %445 = vmatpush3.bf16.msra.mxu1 %v444_v29 }
  0xda   :  { %v108_v19 = vpop.f32.mrb[0].mxu0 }
  0xdb   :  { %v181_v20 = vpop.f32.mrb[0].mxu1  ;;  %v398_v22 = vpop.f32.mrb[1].mxu0 }
  0xdc   :  { %v182_v23 = vadd.f32 %v181_v20, %v108_v19  ;;  %v405_v24 = vpop.f32.mrb[1].mxu1 }
  0xde   :  { %v192_v25 = vadd.f32 %v371_v21, %v182_v23 }
  0xe0   :  { %v193_v26 = vmax.f32 %v192_v25, 0.0 }
  0xe2   :  { %415 = vmatmul.mubr.msk.f32.vlgmr.msra.gmra.mrb[2].mxu0 %vm205_vm2, %v193_v26 }
 0x1b5   :  { %v275_v31 = vpop.f32.mrb[2].mxu0 }
 0x1b6   :  { %v276_v32 = vadd.f32 %v372_v30, %v275_v31  ;;  %v416_v33 = vpop.f32.mrb[3].mxu0 }
 0x1b8   :  { %v279_v34 = vmax.f32 %v276_v32, 0.0 }
 0x1ba   :  { %426 = vmatmul.mubr.msk.f32.vlgmr.msra.gmra.mrb[2].mxu1 %vm205_vm2, %v279_v34 }
 0x28d   :  { %v360_v36 = vpop.f32.mrb[2].mxu1 }
 0x28e   :  { %v361_v37 = vadd.f32 %v374_v35, %v360_v36  ;;  %v427_v38 = vpop.f32.mrb[3].mxu1 }
 0x290   :  { %364 = vst [vmem:[%s569_s9] sm:$0xff] %v361_v37 }

</bundles_post_ra>
